<compile_context>
chip_gen: v7x
topology: tpu7x:2x2x1
jax: 0.10.0
libtpu: 0.0.40
codegen_flags: <defaults>
</compile_context>

<pallas_src>
import jax
import jax.numpy as jnp
from jax.experimental import pallas as pl
from jax.experimental.pallas import tpu as pltpu


def generator_kernel(x_ref, w1_ref, b1_ref, w2_ref, b2_ref, o_ref):
    # fc1 + ReLU  (MXU matmul, f32 accumulation)
    h = jnp.dot(x_ref[...], w1_ref[...], preferred_element_type=jnp.float32)
    h = jnp.maximum(h + b1_ref[...], 0.0)

    # fc2 (natural n_cities width; full-dim last block, masked stores are
    # cheaper than 8x-padded lane-dense writes at n_cities=16)
    logits = jnp.dot(h, w2_ref[...], preferred_element_type=jnp.float32) + b2_ref[...]
    logits = logits + 1e-8

    # Numerically stable softmax over the class axis.
    logits = logits - jnp.max(logits, axis=1, keepdims=True)
    e = jnp.exp(logits)
    denom = jnp.sum(e, axis=1, keepdims=True)
    # Exact divide (not approx reciprocal) so rows sum to 1 to f32 precision.
    o_ref[...] = e / denom


def generator_forward(x, w1, b1, w2, b2, *, block_b_max=512):
    """x: (B, latent_dim) f32.  w1: (latent_dim, 128), b1: (1, 128),
    w2: (128, n_cities), b2: (1, n_cities).  Returns (B, n_cities) f32."""
    B, latent_dim = x.shape
    hidden = w1.shape[1]
    n_cities = w2.shape[1]

    # Batch tile: one step for small B, 512-row tiles for large B; multiple
    # of 8 for the sublane layout.  Pad rows only if strictly necessary.
    tb = min(block_b_max, max(B, 1))
    tb = ((tb + 7) // 8) * 8
    B_pad = ((B + tb - 1) // tb) * tb
    xp = jnp.pad(x, ((0, B_pad - B), (0, 0))) if B_pad != B else x

    out = pl.pallas_call(
        generator_kernel,
        out_shape=jax.ShapeDtypeStruct((B_pad, n_cities), jnp.float32),
        grid=(B_pad // tb,),
        in_specs=[
            pl.BlockSpec((tb, latent_dim), lambda i: (i, 0)),        # x tile
            pl.BlockSpec((latent_dim, hidden), lambda i: (0, 0)),    # w1 (resident)
            pl.BlockSpec((1, hidden), lambda i: (0, 0)),             # b1
            pl.BlockSpec((hidden, n_cities), lambda i: (0, 0)),      # w2 (resident)
            pl.BlockSpec((1, n_cities), lambda i: (0, 0)),           # b2
        ],
        out_specs=pl.BlockSpec((tb, n_cities), lambda i: (i, 0)),
        compiler_params=pltpu.CompilerParams(
            dimension_semantics=("parallel",)),  # shard batch tiles across TCs (v7x)
    )(xp, w1, b1, w2, b2)

    return out if B_pad == B else out[:B]


def xavier_normal(key, fan_in, fan_out):
    # matches torch.nn.init.xavier_normal_: std = sqrt(2 / (fan_in + fan_out))
    std = (2.0 / (fan_in + fan_out)) ** 0.5
    return std * jax.random.normal(key, (fan_in, fan_out), dtype=jnp.float32)


if __name__ == "__main__":
    latent_dim = 32
    n_cities = 16
    batch = 200  # multiple of 8 and <= 512 -> single grid step, no padding

    key = jax.random.PRNGKey(0)
    kx, k1, k2 = jax.random.split(key, 3)

    x = jax.random.normal(kx, (batch, latent_dim), dtype=jnp.float32)

    # Parameters: Xavier-normal weights, zero biases (as in init_weights()).
    w1 = xavier_normal(k1, latent_dim, 128)        # fc1 weight^T: (latent, 128)
    b1 = jnp.zeros((1, 128), dtype=jnp.float32)
    w2 = xavier_normal(k2, 128, n_cities)          # fc2 weight^T: (128, n_cities)
    b2 = jnp.zeros((1, n_cities), dtype=jnp.float32)

    out = generator_forward(x, w1, b1, w2, b2)
    out = jax.block_until_ready(out)
    assert out.shape == (batch, n_cities)

    # Pure-JAX reference (same math as the PyTorch forward, incl. the +1e-8).
    h_ref = jnp.maximum(x @ w1 + b1, 0.0)
    logits_ref = h_ref @ w2 + b2 + 1e-8
    logits_ref = logits_ref - jnp.max(logits_ref, axis=1, keepdims=True)
    ref = jax.nn.softmax(logits_ref, axis=1)

    assert jnp.allclose(out, ref, atol=1e-3, rtol=1e-3), "mismatch vs reference"
    assert jnp.allclose(jnp.sum(out, axis=1), 1.0, atol=1e-3), "rows must sum to 1"
    assert bool(jnp.all(jnp.isfinite(out))), "non-finite output"

    print("KERNEL_OK")
</pallas_src>

<mosaic_0001>
module attributes {stable_mosaic.version = 11 : i64} {
  func.func @generator_kernel(%arg0: i32, %arg1: memref<200x32xf32, #tpu.memory_space<vmem>>, %arg2: memref<32x128xf32, #tpu.memory_space<vmem>>, %arg3: memref<1x128xf32, #tpu.memory_space<vmem>>, %arg4: memref<128x16xf32, #tpu.memory_space<vmem>>, %arg5: memref<1x16xf32, #tpu.memory_space<vmem>>, %arg6: memref<200x16xf32, #tpu.memory_space<vmem>>) attributes {dimension_semantics = [#tpu.dimension_semantics<parallel>], iteration_bounds = array<i64: 1>, scalar_prefetch = 0 : i64, scratch_operands = 0 : i64, tpu.core_type = #tpu.core_type<tc>, window_params = [{transform_indices = @transform_0, window_bounds = array<i64: 200, 32>}, {pipeline_mode = #tpu.pipeline_mode<synchronous>, transform_indices = @transform_1, window_bounds = array<i64: 32, 128>}, {pipeline_mode = #tpu.pipeline_mode<synchronous>, transform_indices = @transform_2, window_bounds = array<i64: 1, 128>}, {pipeline_mode = #tpu.pipeline_mode<synchronous>, transform_indices = @transform_3, window_bounds = array<i64: 128, 16>}, {pipeline_mode = #tpu.pipeline_mode<synchronous>, transform_indices = @transform_4, window_bounds = array<i64: 1, 16>}, {transform_indices = @transform_5, window_bounds = array<i64: 200, 16>}]} {
    %c0 = arith.constant 0 : index
    %c0_0 = arith.constant 0 : index
    %0 = vector.load %arg1[%c0, %c0_0] : memref<200x32xf32, #tpu.memory_space<vmem>>, vector<200x32xf32>
    %c0_1 = arith.constant 0 : index
    %c0_2 = arith.constant 0 : index
    %1 = vector.load %arg2[%c0_1, %c0_2] : memref<32x128xf32, #tpu.memory_space<vmem>>, vector<32x128xf32>
    %cst = arith.constant dense<0.000000e+00> : vector<200x128xf32>
    %2 = tpu.matmul %0, %1, %cst {dimension_numbers = #tpu.dot_dimension_numbers<[1], [0], [0], [1], [0, 0, 1, 1], [], []>} : vector<200x32xf32>, vector<32x128xf32>, vector<200x128xf32> -> vector<200x128xf32>
    %c0_3 = arith.constant 0 : index
    %c0_4 = arith.constant 0 : index
    %3 = vector.load %arg3[%c0_3, %c0_4] : memref<1x128xf32, #tpu.memory_space<vmem>>, vector<1x128xf32>
    %4 = vector.broadcast %3 : vector<1x128xf32> to vector<200x128xf32>
    %5 = arith.addf %2, %4 : vector<200x128xf32>
    %cst_5 = arith.constant 0.000000e+00 : f32
    %6 = vector.broadcast %cst_5 : f32 to vector<200x128xf32>
    %7 = arith.maximumf %5, %6 : vector<200x128xf32>
    %c0_6 = arith.constant 0 : index
    %c0_7 = arith.constant 0 : index
    %8 = vector.load %arg4[%c0_6, %c0_7] : memref<128x16xf32, #tpu.memory_space<vmem>>, vector<128x16xf32>
    %cst_8 = arith.constant dense<0.000000e+00> : vector<200x16xf32>
    %9 = tpu.matmul %7, %8, %cst_8 {dimension_numbers = #tpu.dot_dimension_numbers<[1], [0], [0], [1], [0, 0, 1, 1], [], []>} : vector<200x128xf32>, vector<128x16xf32>, vector<200x16xf32> -> vector<200x16xf32>
    %c0_9 = arith.constant 0 : index
    %c0_10 = arith.constant 0 : index
    %10 = vector.load %arg5[%c0_9, %c0_10] : memref<1x16xf32, #tpu.memory_space<vmem>>, vector<1x16xf32>
    %11 = vector.broadcast %10 : vector<1x16xf32> to vector<200x16xf32>
    %12 = arith.addf %9, %11 : vector<200x16xf32>
    %cst_11 = arith.constant 9.99999993E-9 : f32
    %13 = vector.broadcast %cst_11 : f32 to vector<200x16xf32>
    %14 = arith.addf %12, %13 : vector<200x16xf32>
    %cst_12 = arith.constant dense<0xFF800000> : vector<200xf32>
    %15 = vector.multi_reduction <maximumf>, %14, %cst_12 [1] : vector<200x16xf32> to vector<200xf32>
    %16 = vector.shape_cast %15 : vector<200xf32> to vector<200x1xf32>
    %17 = vector.broadcast %16 : vector<200x1xf32> to vector<200x16xf32>
    %18 = arith.subf %14, %17 : vector<200x16xf32>
    %19 = math.exp %18 : vector<200x16xf32>
    %cst_13 = arith.constant dense<0.000000e+00> : vector<200xf32>
    %20 = vector.multi_reduction <add>, %19, %cst_13 [1] : vector<200x16xf32> to vector<200xf32>
    %21 = vector.shape_cast %20 : vector<200xf32> to vector<200x1xf32>
    %22 = vector.broadcast %21 : vector<200x1xf32> to vector<200x16xf32>
    %23 = arith.divf %19, %22 : vector<200x16xf32>
    %c0_14 = arith.constant 0 : index
    %c0_15 = arith.constant 0 : index
    %24 = vector.load %arg6[%c0_14, %c0_15] : memref<200x16xf32, #tpu.memory_space<vmem>>, vector<200x16xf32>
    tpu.vector_store %arg6[%c0_14, %c0_15], %23 {strides = array<i32>} : memref<200x16xf32, #tpu.memory_space<vmem>>, vector<200x16xf32>,
    return
  }
  func.func @transform_0(%arg0: i32) -> (i32, i32) {
    %c0_i32 = arith.constant 0 : i32
    %c0_i32_0 = arith.constant 0 : i32
    return %arg0, %c0_i32 : i32, i32
  }
  func.func @transform_1(%arg0: i32) -> (i32, i32) {
    %c0_i32 = arith.constant 0 : i32
    %c0_i32_0 = arith.constant 0 : i32
    %c0_i32_1 = arith.constant 0 : i32
    return %c0_i32, %c0_i32_0 : i32, i32
  }
  func.func @transform_2(%arg0: i32) -> (i32, i32) {
    %c0_i32 = arith.constant 0 : i32
    %c0_i32_0 = arith.constant 0 : i32
    %c0_i32_1 = arith.constant 0 : i32
    return %c0_i32, %c0_i32_0 : i32, i32
  }
  func.func @transform_3(%arg0: i32) -> (i32, i32) {
    %c0_i32 = arith.constant 0 : i32
    %c0_i32_0 = arith.constant 0 : i32
    %c0_i32_1 = arith.constant 0 : i32
    return %c0_i32, %c0_i32_0 : i32, i32
  }
  func.func @transform_4(%arg0: i32) -> (i32, i32) {
    %c0_i32 = arith.constant 0 : i32
    %c0_i32_0 = arith.constant 0 : i32
    %c0_i32_1 = arith.constant 0 : i32
    return %c0_i32, %c0_i32_0 : i32, i32
  }
  func.func @transform_5(%arg0: i32) -> (i32, i32) {
    %c0_i32 = arith.constant 0 : i32
    %c0_i32_0 = arith.constant 0 : i32
    return %arg0, %c0_i32 : i32, i32
  }
}

</mosaic_0001>

<bundles_post_ra>
// kernel: tpu_custom_call.1
= control target key start
LH: loop header
LB: loop body
LE: loop exit
PB: predicated region body
PF: predicated region fallthrough
CT: control target
= control target key end

     0   :  { %v1326_v0 = vmov 0.0|0.0   ;;  %vm1327_vm0 = vmmov 0   ;;  %v1328_v4 = vmov 0.0   ;;  %vm56_vm1 = vcmask 261120   ;;  %s2047_s1 = inlined_call_operand.vmem [shape: f32[32,128], index: 1, kind: input, shape index: {}]   ;;  %s2048_s0 = inlined_call_operand.vmem [shape: f32[200,32], index: 0, kind: input, shape index: {}]   ;;  %s2049_s3 = inlined_call_operand.vmem [shape: f32[128,16], index: 3, kind: input, shape index: {}]   ;;  %s2050_s2 = inlined_call_operand.vmem [shape: f32[1,128], index: 2, kind: input, shape index: {}]   ;;  %s2051_s4 = inlined_call_operand.vmem [shape: f32[1,16], index: 4, kind: input, shape index: {}]   ;;  %s2052_s5 = inlined_call_operand.vmem [shape: f32[200,16], index: 5, kind: output, shape index: {}]  }
   0x1   :  { %1177 = vmatprep.subr.bf16.mxu0 %v1326_v0  ;;  %v45_v1 = vld [vmem:[%s2047_s1] sm:$0xff]  ;;  %v46_v2 = vld [vmem:[%s2047_s1 + $0x8] sm:$0xff]  ;;  %v47_v3 = vld [vmem:[%s2047_s1 + $0x10] sm:$0xff]  ;;  %995 = vmatprep.mubr.msk.f32.mxu0 %vm1327_vm0, %v1328_v4  ;;  %vm585_vm2 = vcmask 130048  }
   0x2   :  { %v1178_v5 = vpack.c.bf16 %v46_v2, %v45_v1  ;;  %v48_v6 = vld [vmem:[%s2047_s1 + $0x18] sm:$0xff]  ;;  %1207 = vmatprep.subr.bf16.mxu1 %v1326_v0  ;;  %1111 = vmatprep.mubr.msk.f32.mxu1 %vm1327_vm0, %v1328_v4  ;;  %v20_v8 = vld [vmem:[%s2048_s0] sm:$0xff]  ;;  %v348_v10 = vld [vmem:[%s2049_s3 + $0x8] sm:$0xff] }
   0x3   :  { %v1181_v7 = vpack.c.bf16 %v48_v6, %v47_v3  ;;  %v347_v9 = vld [vmem:[%s2049_s3] sm:$0xff]  ;;  %v349_v11 = vld [vmem:[%s2049_s3 + $0x10] sm:$0xff]  ;;  %v350_v12 = vld [vmem:[%s2049_s3 + $0x18] sm:$0xff] }
   0x4   :  { %1179 = vmatpush3.bf16.msra.mxu0 %v1178_v5  ;;  %v21_v13 = vld [vmem:[%s2048_s0 + $0x8] sm:$0xff]  ;;  %v1184_v14 = vpack.c.bf16 %v348_v10, %v347_v9  ;;  %v1187_v15 = vpack.c.bf16 %v350_v12, %v349_v11  ;;  %v351_v16 = vld [vmem:[%s2049_s3 + $0x20] sm:$0xff]  ;;  %v22_v18 = vld [vmem:[%s2048_s0 + $0x10] sm:$0xff] }
   0x5   :  { %1180 = vmatprep.subr.bf16.mxu0 %v1326_v0  ;;  %v352_v17 = vld [vmem:[%s2049_s3 + $0x28] sm:$0xff]  ;;  %v353_v20 = vld [vmem:[%s2049_s3 + $0x30] sm:$0xff]  ;;  %v354_v21 = vld [vmem:[%s2049_s3 + $0x38] sm:$0xff] }
   0x6   :  { %1215 = vmatpush3.bf16.msra.mxu1 %v1184_v14  ;;  %v1190_v19 = vpack.c.bf16 %v352_v17, %v351_v16  ;;  %v23_v22 = vld [vmem:[%s2048_s0 + $0x18] sm:$0xff]  ;;  %v1193_v23 = vpack.c.bf16 %v354_v21, %v353_v20  ;;  %v355_v24 = vld [vmem:[%s2049_s3 + $0x40] sm:$0xff]  ;;  %v356_v25 = vld [vmem:[%s2049_s3 + $0x48] sm:$0xff] }
   0x7   :  { %1208 = vmatprep.subr.bf16.mxu1 %v1326_v0  ;;  %v24_v26 = vld [vmem:[%s2048_s0 + $0x20] sm:$0xff]  ;;  %v1196_v27 = vpack.c.bf16 %v356_v25, %v355_v24  ;;  %v357_v28 = vld [vmem:[%s2049_s3 + $0x50] sm:$0xff]  ;;  %v358_v29 = vld [vmem:[%s2049_s3 + $0x58] sm:$0xff] }
   0x8   :  { %1182 = vmatpush3.bf16.msra.mxu0 %v1181_v7  ;;  %v25_v30 = vld [vmem:[%s2048_s0 + $0x28] sm:$0xff]  ;;  %v1199_v31 = vpack.c.bf16 %v358_v29, %v357_v28  ;;  %v359_v32 = vld [vmem:[%s2049_s3 + $0x60] sm:$0xff]  ;;  %v26_v34 = vld [vmem:[%s2048_s0 + $0x30] sm:$0xff] }
   0x9   :  { %1183 = vmatprep.subr.bf16.mxu0 %v1326_v0  ;;  %v360_v33 = vld [vmem:[%s2049_s3 + $0x68] sm:$0xff]  ;;  %v27_v36 = vld [vmem:[%s2048_s0 + $0x38] sm:$0xff]  ;;  %v28_v37 = vld [vmem:[%s2048_s0 + $0x40] sm:$0xff] }
   0xa   :  { %1216 = vmatpush3.bf16.msra.mxu1 %v1187_v15  ;;  %v1202_v35 = vpack.c.bf16 %v360_v33, %v359_v32  ;;  %v29_v38 = vld [vmem:[%s2048_s0 + $0x48] sm:$0xff]  ;;  %v30_v39 = vld [vmem:[%s2048_s0 + $0x50] sm:$0xff]  ;;  %v31_v40 = vld [vmem:[%s2048_s0 + $0x58] sm:$0xff] }
   0xb   :  { %996 = vmatmul.mubr.msk.f32.vlgmr.msra.gmra.mrb[0].mxu0 %vm56_vm1, %v20_v8  ;;  %1209 = vmatprep.subr.bf16.mxu1 %v1326_v0  ;;  %v32_v41 = vld [vmem:[%s2048_s0 + $0x60] sm:$0xff]  ;;  %v33_v42 = vld [vmem:[%s2048_s0 + $0x68] sm:$0xff]  ;;  %v34_v43 = vld [vmem:[%s2048_s0 + $0x70] sm:$0xff] }
   0xc   :  { %998 = vmatprep.mubr.msk.f32.mxu0 %vm1327_vm0, %v1328_v4  ;;  %1185 = vmatpush3.bf16.msra.mxu0 %v1184_v14  ;;  %v35_v44 = vld [vmem:[%s2048_s0 + $0x78] sm:$0xff]  ;;  %v36_v45 = vld [vmem:[%s2048_s0 + $0x80] sm:$0xff]  ;;  %v37_v46 = vld [vmem:[%s2048_s0 + $0x88] sm:$0xff] }
   0xd   :  { %1186 = vmatprep.subr.bf16.mxu0 %v1326_v0  ;;  %v38_v47 = vld [vmem:[%s2048_s0 + $0x90] sm:$0xff]  ;;  %v39_v48 = vld [vmem:[%s2048_s0 + $0x98] sm:$0xff]  ;;  %v40_v49 = vld [vmem:[%s2048_s0 + $0xa0] sm:$0xff] }
   0xe   :  { %1217 = vmatpush3.bf16.msra.mxu1 %v1190_v19  ;;  %v41_v50 = vld [vmem:[%s2048_s0 + $0xa8] sm:$0xff]  ;;  %v361_v51 = vld [vmem:[%s2049_s3 + $0x70] sm:$0xff]  ;;  %v362_v52 = vld [vmem:[%s2049_s3 + $0x78] sm:$0xff] }
   0xf   :  { %999 = vmatmul.mubr.msk.f32.gmra.mrb[2].mxu0 %vm56_vm1, %v21_v13  ;;  %1210 = vmatprep.subr.bf16.mxu1 %v1326_v0  ;;  %v1205_v53 = vpack.c.bf16 %v362_v52, %v361_v51  ;;  %v42_v54 = vld [vmem:[%s2048_s0 + $0xb0] sm:$0xff]  ;;  %v43_v55 = vld [vmem:[%s2048_s0 + $0xb8] sm:$0xff]  ;;  %v44_v56 = vld [vmem:[%s2048_s0 + $0xc0] sm:$0xff] }
  0x10   :  { %1001 = vmatprep.mubr.msk.f32.mxu0 %vm1327_vm0, %v1328_v4  ;;  %1188 = vmatpush3.bf16.msra.mxu0 %v1187_v15  ;;  %v1594_v57 = vld [vmem:[%s2050_s2] ss:$0 sm:$0xff] }
  0x11   :  { %1189 = vmatprep.subr.bf16.mxu0 %v1326_v0 }
  0x12   :  { %1218 = vmatpush3.bf16.msra.mxu1 %v1193_v23 }
  0x13   :  { %1002 = vmatmul.mubr.msk.f32.gmra.mrb[4].mxu0 %vm56_vm1, %v22_v18  ;;  %1211 = vmatprep.subr.bf16.mxu1 %v1326_v0 }
  0x14   :  { %1004 = vmatprep.mubr.msk.f32.mxu0 %vm1327_vm0, %v1328_v4  ;;  %1191 = vmatpush3.bf16.msra.mxu0 %v1190_v19 }
  0x15   :  { %1192 = vmatprep.subr.bf16.mxu0 %v1326_v0 }
  0x16   :  { %1219 = vmatpush3.bf16.msra.mxu1 %v1196_v27 }
  0x17   :  { %1005 = vmatmul.mubr.msk.f32.gmra.mrb[6].mxu0 %vm56_vm1, %v23_v22  ;;  %1212 = vmatprep.subr.bf16.mxu1 %v1326_v0 }
  0x18   :  { %1007 = vmatprep.mubr.msk.f32.mxu0 %vm1327_vm0, %v1328_v4  ;;  %1194 = vmatpush3.bf16.msra.mxu0 %v1193_v23 }
  0x19   :  { %1195 = vmatprep.subr.bf16.mxu0 %v1326_v0 }
  0x1a   :  { %1220 = vmatpush3.bf16.msra.mxu1 %v1199_v31 }
  0x1b   :  { %1008 = vmatmul.mubr.msk.f32.gmra.mrb[8].mxu0 %vm56_vm1, %v24_v26  ;;  %1213 = vmatprep.subr.bf16.mxu1 %v1326_v0 }
  0x1c   :  { %1010 = vmatprep.mubr.msk.f32.mxu0 %vm1327_vm0, %v1328_v4  ;;  %1197 = vmatpush3.bf16.msra.mxu0 %v1196_v27 }
  0x1d   :  { %1198 = vmatprep.subr.bf16.mxu0 %v1326_v0 }
  0x1e   :  { %1221 = vmatpush3.bf16.msra.mxu1 %v1202_v35 }
  0x1f   :  { %1011 = vmatmul.mubr.msk.f32.gmra.mrb[10].mxu0 %vm56_vm1, %v25_v30  ;;  %1214 = vmatprep.subr.bf16.mxu1 %v1326_v0 }
  0x20   :  { %1013 = vmatprep.mubr.msk.f32.mxu0 %vm1327_vm0, %v1328_v4  ;;  %1200 = vmatpush3.bf16.msra.mxu0 %v1199_v31 }
  0x21   :  { %1201 = vmatprep.subr.bf16.mxu0 %v1326_v0 }
  0x22   :  { %1222 = vmatpush3.bf16.msra.mxu1 %v1205_v53 }
  0x23   :  { %1014 = vmatmul.mubr.msk.f32.gmra.mrb[12].mxu0 %vm56_vm1, %v26_v34 }
  0x24   :  { %1016 = vmatprep.mubr.msk.f32.mxu0 %vm1327_vm0, %v1328_v4  ;;  %1203 = vmatpush3.bf16.msra.mxu0 %v1202_v35 }
  0x25   :  { %1204 = vmatprep.subr.bf16.mxu0 %v1326_v0 }
  0x27   :  { %1017 = vmatmul.mubr.msk.f32.gmra.mrb[14].mxu0 %vm56_vm1, %v27_v36 }
  0x28   :  { %1019 = vmatprep.mubr.msk.f32.mxu0 %vm1327_vm0, %v1328_v4  ;;  %1206 = vmatpush3.bf16.msra.mxu0 %v1205_v53 }
  0x2b   :  { %1020 = vmatmul.mubr.msk.f32.gmra.mrb[16].mxu0 %vm56_vm1, %v28_v37 }
  0x2c   :  { %1022 = vmatprep.mubr.msk.f32.mxu0 %vm1327_vm0, %v1328_v4 }
  0x2f   :  { %1023 = vmatmul.mubr.msk.f32.gmra.mrb[18].mxu0 %vm56_vm1, %v29_v38 }
  0x30   :  { %1025 = vmatprep.mubr.msk.f32.mxu0 %vm1327_vm0, %v1328_v4 }
  0x33   :  { %1026 = vmatmul.mubr.msk.f32.gmra.mrb[20].mxu0 %vm56_vm1, %v30_v39 }
  0x34   :  { %1028 = vmatprep.mubr.msk.f32.mxu0 %vm1327_vm0, %v1328_v4 }
  0x37   :  { %1029 = vmatmul.mubr.msk.f32.gmra.mrb[22].mxu0 %vm56_vm1, %v31_v40 }
  0x38   :  { %1031 = vmatprep.mubr.msk.f32.mxu0 %vm1327_vm0, %v1328_v4 }
  0x3b   :  { %1032 = vmatmul.mubr.msk.f32.gmra.mrb[24].mxu0 %vm56_vm1, %v32_v41 }
  0x3c   :  { %1034 = vmatprep.mubr.msk.f32.mxu0 %vm1327_vm0, %v1328_v4 }
  0x3f   :  { %1035 = vmatmul.mubr.msk.f32.gmra.mrb[26].mxu0 %vm56_vm1, %v33_v42 }
  0x40   :  { %1037 = vmatprep.mubr.msk.f32.mxu0 %vm1327_vm0, %v1328_v4 }
  0x43   :  { %1038 = vmatmul.mubr.msk.f32.gmra.mrb[28].mxu0 %vm56_vm1, %v34_v43 }
  0x44   :  { %1040 = vmatprep.mubr.msk.f32.mxu0 %vm1327_vm0, %v1328_v4 }
  0x47   :  { %1041 = vmatmul.mubr.msk.f32.gmra.mrb[30].mxu0 %vm56_vm1, %v35_v44 }
  0x48   :  { %1043 = vmatprep.mubr.msk.f32.mxu0 %vm1327_vm0, %v1328_v4 }
  0x4b   :  { %1044 = vmatmul.mubr.msk.f32.gmra.mrb[32].mxu0 %vm56_vm1, %v36_v45 }
  0x4c   :  { %1046 = vmatprep.mubr.msk.f32.mxu0 %vm1327_vm0, %v1328_v4 }
  0x4f   :  { %1047 = vmatmul.mubr.msk.f32.gmra.mrb[34].mxu0 %vm56_vm1, %v37_v46 }
  0x50   :  { %1049 = vmatprep.mubr.msk.f32.mxu0 %vm1327_vm0, %v1328_v4 }
  0x53   :  { %1050 = vmatmul.mubr.msk.f32.gmra.mrb[36].mxu0 %vm56_vm1, %v38_v47 }
  0x54   :  { %1052 = vmatprep.mubr.msk.f32.mxu0 %vm1327_vm0, %v1328_v4 }
  0x57   :  { %1053 = vmatmul.mubr.msk.f32.gmra.mrb[38].mxu0 %vm56_vm1, %v39_v48 }
  0x58   :  { %1055 = vmatprep.mubr.msk.f32.mxu0 %vm1327_vm0, %v1328_v4 }
  0x5b   :  { %1056 = vmatmul.mubr.msk.f32.gmra.mrb[40].mxu0 %vm56_vm1, %v40_v49 }
  0x5c   :  { %1058 = vmatprep.mubr.msk.f32.mxu0 %vm1327_vm0, %v1328_v4 }
  0x5f   :  { %1059 = vmatmul.mubr.msk.f32.gmra.mrb[42].mxu0 %vm56_vm1, %v41_v50 }
  0x60   :  { %1061 = vmatprep.mubr.msk.f32.mxu0 %vm1327_vm0, %v1328_v4 }
  0x63   :  { %1062 = vmatmul.mubr.msk.f32.gmra.mrb[44].mxu0 %vm56_vm1, %v42_v54 }
  0x64   :  { %1064 = vmatprep.mubr.msk.f32.mxu0 %vm1327_vm0, %v1328_v4 }
  0x67   :  { %1065 = vmatmul.mubr.msk.f32.gmra.mrb[46].mxu0 %vm56_vm1, %v43_v55 }
  0x68   :  { %1067 = vmatprep.mubr.msk.f32.mxu0 %vm1327_vm0, %v1328_v4 }
  0x6b   :  { %1068 = vmatmul.mubr.msk.f32.gmra.mrb[48].mxu0 %vm56_vm1, %v44_v56 }
  0x6c   :  { %1102 = vmatprep.mubr.msk.f32.mxu0 %vm1327_vm0, %v1328_v4 }
  0xde   :  { %v198_v58 = vpop.f32.mrb[0].mxu0 }
  0xdf   :  { %v199_v59 = vadd.f32 %v1594_v57, %v198_v58  ;;  %v997_v60 = vpop.f32.mrb[1].mxu0 }
  0xe1   :  { %v322_v61 = vmax.f32 %v199_v59, 0.0 }
  0xe2   :  { %v203_v62 = vpop.f32.mrb[2].mxu0 }
  0xe3   :  { %v204_v63 = vadd.f32 %v1594_v57, %v203_v62  ;;  %v1000_v0 = vpop.f32.mrb[3].mxu0  ;;  %1103 = vmatmul.mubr.f32.vlgmr.msra.gmra.mrb[50].mxu0 %v322_v61 }
  0xe4   :  { %1105 = vmatprep.mubr.msk.f32.mxu0 %vm1327_vm0, %v1328_v4 }
  0xe5   :  { %v323_v1 = vmax.f32 %v204_v63, 0.0 }
  0xe6   :  { %v208_v2 = vpop.f32.mrb[4].mxu0 }
  0xe7   :  { %v209_v3 = vadd.f32 %v1594_v57, %v208_v2  ;;  %v1003_v5 = vpop.f32.mrb[5].mxu0  ;;  %1106 = vmatmul.mubr.f32.gmra.mrb[52].mxu0 %v323_v1 }
  0xe8   :  { %1108 = vmatprep.mubr.msk.f32.mxu0 %vm1327_vm0, %v1328_v4 }
  0xe9   :  { %v324_v6 = vmax.f32 %v209_v3, 0.0 }
  0xea   :  { %v213_v7 = vpop.f32.mrb[6].mxu0 }
  0xeb   :  { %v214_v8 = vadd.f32 %v1594_v57, %v213_v7  ;;  %v1006_v9 = vpop.f32.mrb[7].mxu0  ;;  %1109 = vmatmul.mubr.f32.gmra.mrb[54].mxu0 %v324_v6 }
  0xed   :  { %v325_v10 = vmax.f32 %v214_v8, 0.0 }
  0xee   :  { %v218_v11 = vpop.f32.mrb[8].mxu0 }
  0xef   :  { %v219_v12 = vadd.f32 %v1594_v57, %v218_v11  ;;  %v1009_v13 = vpop.f32.mrb[9].mxu0  ;;  %1112 = vmatmul.mubr.f32.vlgmr.msra.gmra.mrb[0].mxu1 %v325_v10 }
  0xf0   :  { %1114 = vmatprep.mubr.msk.f32.mxu1 %vm1327_vm0, %v1328_v4 }
  0xf1   :  { %v326_v14 = vmax.f32 %v219_v12, 0.0 }
  0xf2   :  { %v223_v15 = vpop.f32.mrb[10].mxu0 }
  0xf3   :  { %v224_v16 = vadd.f32 %v1594_v57, %v223_v15  ;;  %v1012_v17 = vpop.f32.mrb[11].mxu0  ;;  %1115 = vmatmul.mubr.f32.gmra.mrb[2].mxu1 %v326_v14 }
  0xf4   :  { %1117 = vmatprep.mubr.msk.f32.mxu1 %vm1327_vm0, %v1328_v4 }
  0xf5   :  { %v327_v18 = vmax.f32 %v224_v16, 0.0 }
  0xf6   :  { %v228_v19 = vpop.f32.mrb[12].mxu0 }
  0xf7   :  { %v229_v20 = vadd.f32 %v1594_v57, %v228_v19  ;;  %v1015_v21 = vpop.f32.mrb[13].mxu0  ;;  %1118 = vmatmul.mubr.f32.gmra.mrb[4].mxu1 %v327_v18 }
  0xf8   :  { %1120 = vmatprep.mubr.msk.f32.mxu1 %vm1327_vm0, %v1328_v4 }
  0xf9   :  { %v328_v22 = vmax.f32 %v229_v20, 0.0 }
  0xfa   :  { %v233_v23 = vpop.f32.mrb[14].mxu0 }
  0xfb   :  { %v234_v24 = vadd.f32 %v1594_v57, %v233_v23  ;;  %v1018_v25 = vpop.f32.mrb[15].mxu0  ;;  %1121 = vmatmul.mubr.f32.gmra.mrb[6].mxu1 %v328_v22 }
  0xfc   :  { %1123 = vmatprep.mubr.msk.f32.mxu1 %vm1327_vm0, %v1328_v4 }
  0xfd   :  { %v329_v26 = vmax.f32 %v234_v24, 0.0 }
  0xfe   :  { %v238_v27 = vpop.f32.mrb[16].mxu0 }
  0xff   :  { %v239_v28 = vadd.f32 %v1594_v57, %v238_v27  ;;  %v1021_v29 = vpop.f32.mrb[17].mxu0  ;;  %1124 = vmatmul.mubr.f32.gmra.mrb[8].mxu1 %v329_v26 }
 0x100   :  { %1126 = vmatprep.mubr.msk.f32.mxu1 %vm1327_vm0, %v1328_v4 }
 0x101   :  { %v330_v30 = vmax.f32 %v239_v28, 0.0 }
 0x102   :  { %v243_v31 = vpop.f32.mrb[18].mxu0 }
 0x103   :  { %v244_v32 = vadd.f32 %v1594_v57, %v243_v31  ;;  %v1024_v33 = vpop.f32.mrb[19].mxu0  ;;  %1127 = vmatmul.mubr.f32.gmra.mrb[10].mxu1 %v330_v30 }
 0x104   :  { %1129 = vmatprep.mubr.msk.f32.mxu1 %vm1327_vm0, %v1328_v4  ;;  %v1670_v33 = vld [vmem:[%s2051_s4] ss:$0 sm:$0xff] }
 0x105   :  { %v331_v34 = vmax.f32 %v244_v32, 0.0 }
 0x106   :  { %v248_v35 = vpop.f32.mrb[20].mxu0 }
 0x107   :  { %v249_v36 = vadd.f32 %v1594_v57, %v248_v35  ;;  %v1027_v37 = vpop.f32.mrb[21].mxu0  ;;  %1130 = vmatmul.mubr.f32.gmra.mrb[12].mxu1 %v331_v34 }
 0x108   :  { %1132 = vmatprep.mubr.msk.f32.mxu1 %vm1327_vm0, %v1328_v4 }
 0x109   :  { %v332_v38 = vmax.f32 %v249_v36, 0.0 }
 0x10a   :  { %v253_v39 = vpop.f32.mrb[22].mxu0 }
 0x10b   :  { %v254_v40 = vadd.f32 %v1594_v57, %v253_v39  ;;  %v1030_v41 = vpop.f32.mrb[23].mxu0  ;;  %1133 = vmatmul.mubr.f32.gmra.mrb[14].mxu1 %v332_v38 }
 0x10c   :  { %1135 = vmatprep.mubr.msk.f32.mxu1 %vm1327_vm0, %v1328_v4 }
 0x10d   :  { %v333_v42 = vmax.f32 %v254_v40, 0.0 }
 0x10e   :  { %v258_v43 = vpop.f32.mrb[24].mxu0 }
 0x10f   :  { %v259_v44 = vadd.f32 %v1594_v57, %v258_v43  ;;  %v1033_v45 = vpop.f32.mrb[25].mxu0  ;;  %1136 = vmatmul.mubr.f32.gmra.mrb[16].mxu1 %v333_v42 }
 0x110   :  { %1138 = vmatprep.mubr.msk.f32.mxu1 %vm1327_vm0, %v1328_v4 }
 0x111   :  { %v334_v46 = vmax.f32 %v259_v44, 0.0 }
 0x112   :  { %v263_v47 = vpop.f32.mrb[26].mxu0 }
 0x113   :  { %v264_v48 = vadd.f32 %v1594_v57, %v263_v47  ;;  %v1036_v49 = vpop.f32.mrb[27].mxu0  ;;  %1139 = vmatmul.mubr.f32.gmra.mrb[18].mxu1 %v334_v46 }
 0x114   :  { %1141 = vmatprep.mubr.msk.f32.mxu1 %vm1327_vm0, %v1328_v4 }
 0x115   :  { %v335_v50 = vmax.f32 %v264_v48, 0.0 }
 0x116   :  { %v268_v51 = vpop.f32.mrb[28].mxu0 }
 0x117   :  { %v269_v52 = vadd.f32 %v1594_v57, %v268_v51  ;;  %v1039_v53 = vpop.f32.mrb[29].mxu0  ;;  %1142 = vmatmul.mubr.f32.gmra.mrb[20].mxu1 %v335_v50 }
 0x118   :  { %1144 = vmatprep.mubr.msk.f32.mxu1 %vm1327_vm0, %v1328_v4 }
 0x119   :  { %v336_v54 = vmax.f32 %v269_v52, 0.0 }
 0x11a   :  { %v273_v55 = vpop.f32.mrb[30].mxu0 }
 0x11b   :  { %v274_v56 = vadd.f32 %v1594_v57, %v273_v55  ;;  %v1042_v58 = vpop.f32.mrb[31].mxu0  ;;  %1145 = vmatmul.mubr.f32.gmra.mrb[22].mxu1 %v336_v54 }
 0x11c   :  { %1147 = vmatprep.mubr.msk.f32.mxu1 %vm1327_vm0, %v1328_v4 }
 0x11d   :  { %v337_v59 = vmax.f32 %v274_v56, 0.0 }
 0x11e   :  { %v278_v60 = vpop.f32.mrb[32].mxu0 }
 0x11f   :  { %v279_v61 = vadd.f32 %v1594_v57, %v278_v60  ;;  %v1045_v62 = vpop.f32.mrb[33].mxu0  ;;  %1148 = vmatmul.mubr.f32.gmra.mrb[24].mxu1 %v337_v59 }
 0x120   :  { %1150 = vmatprep.mubr.msk.f32.mxu1 %vm1327_vm0, %v1328_v4 }
 0x121   :  { %v338_v63 = vmax.f32 %v279_v61, 0.0 }
 0x122   :  { %v283_v0 = vpop.f32.mrb[34].mxu0 }
 0x123   :  { %v284_v1 = vadd.f32 %v1594_v57, %v283_v0  ;;  %v1048_v2 = vpop.f32.mrb[35].mxu0  ;;  %1151 = vmatmul.mubr.f32.gmra.mrb[26].mxu1 %v338_v63 }
 0x124   :  { %1153 = vmatprep.mubr.msk.f32.mxu1 %vm1327_vm0, %v1328_v4 }
 0x125   :  { %v339_v3 = vmax.f32 %v284_v1, 0.0 }
 0x126   :  { %v288_v5 = vpop.f32.mrb[36].mxu0 }
 0x127   :  { %v289_v6 = vadd.f32 %v1594_v57, %v288_v5  ;;  %v1051_v7 = vpop.f32.mrb[37].mxu0  ;;  %1154 = vmatmul.mubr.f32.gmra.mrb[28].mxu1 %v339_v3 }
 0x128   :  { %1156 = vmatprep.mubr.msk.f32.mxu1 %vm1327_vm0, %v1328_v4 }
 0x129   :  { %v340_v8 = vmax.f32 %v289_v6, 0.0 }
 0x12a   :  { %v293_v9 = vpop.f32.mrb[38].mxu0 }
 0x12b   :  { %v294_v10 = vadd.f32 %v1594_v57, %v293_v9  ;;  %v1054_v11 = vpop.f32.mrb[39].mxu0  ;;  %1157 = vmatmul.mubr.f32.gmra.mrb[30].mxu1 %v340_v8 }
 0x12c   :  { %1159 = vmatprep.mubr.msk.f32.mxu1 %vm1327_vm0, %v1328_v4 }
 0x12d   :  { %v341_v12 = vmax.f32 %v294_v10, 0.0 }
 0x12e   :  { %v298_v13 = vpop.f32.mrb[40].mxu0 }
 0x12f   :  { %v299_v14 = vadd.f32 %v1594_v57, %v298_v13  ;;  %v1057_v15 = vpop.f32.mrb[41].mxu0  ;;  %1160 = vmatmul.mubr.f32.gmra.mrb[32].mxu1 %v341_v12 }
 0x130   :  { %1162 = vmatprep.mubr.msk.f32.mxu1 %vm1327_vm0, %v1328_v4 }
 0x131   :  { %v342_v16 = vmax.f32 %v299_v14, 0.0 }
 0x132   :  { %v303_v17 = vpop.f32.mrb[42].mxu0 }
 0x133   :  { %v304_v18 = vadd.f32 %v1594_v57, %v303_v17  ;;  %v1060_v19 = vpop.f32.mrb[43].mxu0  ;;  %1163 = vmatmul.mubr.f32.gmra.mrb[34].mxu1 %v342_v16 }
 0x134   :  { %1165 = vmatprep.mubr.msk.f32.mxu1 %vm1327_vm0, %v1328_v4 }
 0x135   :  { %v343_v20 = vmax.f32 %v304_v18, 0.0 }
 0x136   :  { %v308_v21 = vpop.f32.mrb[44].mxu0 }
 0x137   :  { %v309_v22 = vadd.f32 %v1594_v57, %v308_v21  ;;  %v1063_v23 = vpop.f32.mrb[45].mxu0  ;;  %1166 = vmatmul.mubr.f32.gmra.mrb[36].mxu1 %v343_v20 }
 0x138   :  { %1168 = vmatprep.mubr.msk.f32.mxu1 %vm1327_vm0, %v1328_v4 }
 0x139   :  { %v344_v24 = vmax.f32 %v309_v22, 0.0 }
 0x13a   :  { %v313_v25 = vpop.f32.mrb[46].mxu0 }
 0x13b   :  { %v314_v26 = vadd.f32 %v1594_v57, %v313_v25  ;;  %v1066_v27 = vpop.f32.mrb[47].mxu0  ;;  %1169 = vmatmul.mubr.f32.gmra.mrb[38].mxu1 %v344_v24 }
 0x13c   :  { %1171 = vmatprep.mubr.msk.f32.mxu1 %vm1327_vm0, %v1328_v4 }
 0x13d   :  { %v345_v28 = vmax.f32 %v314_v26, 0.0 }
 0x13e   :  { %v318_v29 = vpop.f32.mrb[48].mxu0 }
 0x13f   :  { %v319_v30 = vadd.f32 %v1594_v57, %v318_v29  ;;  %v1069_v31 = vpop.f32.mrb[49].mxu0  ;;  %1172 = vmatmul.mubr.f32.gmra.mrb[40].mxu1 %v345_v28 }
 0x140   :  { %1174 = vmatprep.mubr.msk.f32.mxu1 %vm1327_vm0, %v1328_v4 }
 0x141   :  { %v346_v32 = vmax.f32 %v319_v30, 0.0 }
 0x143   :  { %1175 = vmatmul.mubr.f32.gmra.mrb[42].mxu1 %v346_v32 }
 0x1b6   :  { %v436_v34 = vpop.f32.mrb[50].mxu0 }
 0x1b7   :  { %v437_v35 = vadd.f32 %v1670_v33, %v436_v34  ;;  %v1104_v36 = vpop.f32.mrb[51].mxu0 }
 0x1b9   :  { %v1673_v37 = vadd.f32 1e-08, %v437_v35 }
 0x1ba   :  { %v441_v57 = vpop.f32.mrb[52].mxu0 }
 0x1bb   :  { %v442_v38 = vadd.f32 %v1670_v33, %v441_v57  ;;  %v1107_v39 = vpop.f32.mrb[53].mxu0  ;;  %v586_v4 = vsel %vm585_vm2, %v1673_v37, -inf }
 0x1bc   :  { %587 = vmax.xlane.f32.xlu0 %v586_v4 }
 0x1bd   :  { %v1678_v40 = vadd.f32 1e-08, %v442_v38 }
 0x1be   :  { %v446_v41 = vpop.f32.mrb[54].mxu0 }
 0x1bf   :  { %v447_v42 = vadd.f32 %v1670_v33, %v446_v41  ;;  %v1110_v43 = vpop.f32.mrb[55].mxu0  ;;  %v589_v44 = vsel %vm585_vm2, %v1678_v40, -inf }
 0x1c0   :  { %590 = vmax.xlane.f32.xlu0 %v589_v44 }
 0x1c1   :  { %v1683_v45 = vadd.f32 1e-08, %v447_v42 }
 0x1c2   :  { %v451_v46 = vpop.f32.mrb[0].mxu1 }
 0x1c3   :  { %v452_v47 = vadd.f32 %v1670_v33, %v451_v46  ;;  %v1113_v48 = vpop.f32.mrb[1].mxu1  ;;  %v592_v49 = vsel %vm585_vm2, %v1683_v45, -inf }
 0x1c4   :  { %593 = vmax.xlane.f32.xlu1 %v592_v49 }
 0x1c5   :  { %v1688_v50 = vadd.f32 1e-08, %v452_v47 }
 0x1c6   :  { %v456_v51 = vpop.f32.mrb[2].mxu1 }
 0x1c7   :  { %v457_v52 = vadd.f32 %v1670_v33, %v456_v51  ;;  %v1116_v53 = vpop.f32.mrb[3].mxu1  ;;  %v595_v54 = vsel %vm585_vm2, %v1688_v50, -inf }
 0x1c8   :  { %596 = vmax.xlane.f32.xlu1 %v595_v54 }
 0x1c9   :  { %v1693_v55 = vadd.f32 1e-08, %v457_v52 }
 0x1ca   :  { %v461_v56 = vpop.f32.mrb[4].mxu1 }
 0x1cb   :  { %v462_v58 = vadd.f32 %v1670_v33, %v461_v56  ;;  %v1119_v59 = vpop.f32.mrb[5].mxu1  ;;  %v598_v60 = vsel %vm585_vm2, %v1693_v55, -inf }
 0x1cc   :  { %599 = vmax.xlane.f32.xlu0 %v598_v60 }
 0x1cd   :  { %v1698_v61 = vadd.f32 1e-08, %v462_v58 }
 0x1ce   :  { %v466_v62 = vpop.f32.mrb[6].mxu1 }
 0x1cf   :  { %v467_v63 = vadd.f32 %v1670_v33, %v466_v62  ;;  %v1122_v0 = vpop.f32.mrb[7].mxu1  ;;  %v601_v1 = vsel %vm585_vm2, %v1698_v61, -inf }
 0x1d0   :  { %602 = vmax.xlane.f32.xlu1 %v601_v1 }
 0x1d1   :  { %v1703_v2 = vadd.f32 1e-08, %v467_v63 }
 0x1d2   :  { %v471_v3 = vpop.f32.mrb[8].mxu1 }
 0x1d3   :  { %v472_v5 = vadd.f32 %v1670_v33, %v471_v3  ;;  %v1125_v6 = vpop.f32.mrb[9].mxu1  ;;  %v604_v7 = vsel %vm585_vm2, %v1703_v2, -inf }
 0x1d4   :  { %605 = vmax.xlane.f32.xlu0 %v604_v7 }
 0x1d5   :  { %v1708_v8 = vadd.f32 1e-08, %v472_v5 }
 0x1d6   :  { %v476_v9 = vpop.f32.mrb[10].mxu1 }
 0x1d7   :  { %v477_v10 = vadd.f32 %v1670_v33, %v476_v9  ;;  %v1128_v11 = vpop.f32.mrb[11].mxu1  ;;  %v607_v12 = vsel %vm585_vm2, %v1708_v8, -inf }
 0x1d8   :  { %608 = vmax.xlane.f32.xlu1 %v607_v12 }
 0x1d9   :  { %v1713_v13 = vadd.f32 1e-08, %v477_v10 }
 0x1da   :  { %v481_v14 = vpop.f32.mrb[12].mxu1 }
 0x1db   :  { %v482_v15 = vadd.f32 %v1670_v33, %v481_v14  ;;  %v1131_v16 = vpop.f32.mrb[13].mxu1  ;;  %v610_v17 = vsel %vm585_vm2, %v1713_v13, -inf }
 0x1dc   :  { %611 = vmax.xlane.f32.xlu0 %v610_v17 }
 0x1dd   :  { %v1718_v18 = vadd.f32 1e-08, %v482_v15 }
 0x1de   :  { %v486_v19 = vpop.f32.mrb[14].mxu1 }
 0x1df   :  { %v487_v20 = vadd.f32 %v1670_v33, %v486_v19  ;;  %v1134_v21 = vpop.f32.mrb[15].mxu1  ;;  %v613_v22 = vsel %vm585_vm2, %v1718_v18, -inf }
 0x1e0   :  { %614 = vmax.xlane.f32.xlu1 %v613_v22 }
 0x1e1   :  { %v1723_v23 = vadd.f32 1e-08, %v487_v20 }
 0x1e2   :  { %v491_v24 = vpop.f32.mrb[16].mxu1 }
 0x1e3   :  { %v492_v25 = vadd.f32 %v1670_v33, %v491_v24  ;;  %v1137_v26 = vpop.f32.mrb[17].mxu1  ;;  %v616_v27 = vsel %vm585_vm2, %v1723_v23, -inf }
 0x1e4   :  { %617 = vmax.xlane.f32.xlu0 %v616_v27 }
 0x1e5   :  { %v1728_v28 = vadd.f32 1e-08, %v492_v25 }
 0x1e6   :  { %v496_v29 = vpop.f32.mrb[18].mxu1 }
 0x1e7   :  { %v497_v30 = vadd.f32 %v1670_v33, %v496_v29  ;;  %v1140_v31 = vpop.f32.mrb[19].mxu1  ;;  %v619_v32 = vsel %vm585_vm2, %v1728_v28, -inf }
 0x1e8   :  { %620 = vmax.xlane.f32.xlu1 %v619_v32 }
 0x1e9   :  { %v1733_v34 = vadd.f32 1e-08, %v497_v30 }
 0x1ea   :  { %v501_v35 = vpop.f32.mrb[20].mxu1 }
 0x1eb   :  { %v502_v36 = vadd.f32 %v1670_v33, %v501_v35  ;;  %v1143_v57 = vpop.f32.mrb[21].mxu1  ;;  %v622_v38 = vsel %vm585_vm2, %v1733_v34, -inf }
 0x1ec   :  { %623 = vmax.xlane.f32.xlu0 %v622_v38 }
 0x1ed   :  { %v1738_v39 = vadd.f32 1e-08, %v502_v36 }
 0x1ee   :  { %v506_v4 = vpop.f32.mrb[22].mxu1 }
 0x1ef   :  { %v507_v41 = vadd.f32 %v1670_v33, %v506_v4  ;;  %v1146_v42 = vpop.f32.mrb[23].mxu1  ;;  %v625_v43 = vsel %vm585_vm2, %v1738_v39, -inf }
 0x1f0   :  { %626 = vmax.xlane.f32.xlu1 %v625_v43 }
 0x1f1   :  { %v1743_v44 = vadd.f32 1e-08, %v507_v41 }
 0x1f2   :  { %v511_v46 = vpop.f32.mrb[24].mxu1 }
 0x1f3   :  { %v512_v47 = vadd.f32 %v1670_v33, %v511_v46  ;;  %v1149_v48 = vpop.f32.mrb[25].mxu1  ;;  %v628_v49 = vsel %vm585_vm2, %v1743_v44, -inf }
 0x1f4   :  { %629 = vmax.xlane.f32.xlu0 %v628_v49 }
 0x1f5   :  { %v1748_v51 = vadd.f32 1e-08, %v512_v47 }
 0x1f6   :  { %v516_v52 = vpop.f32.mrb[26].mxu1 }
 0x1f7   :  { %v517_v53 = vadd.f32 %v1670_v33, %v516_v52  ;;  %v1152_v54 = vpop.f32.mrb[27].mxu1  ;;  %v631_v56 = vsel %vm585_vm2, %v1748_v51, -inf }
 0x1f8   :  { %632 = vmax.xlane.f32.xlu1 %v631_v56 }
 0x1f9   :  { %v1753_v58 = vadd.f32 1e-08, %v517_v53 }
 0x1fa   :  { %v521_v59 = vpop.f32.mrb[28].mxu1 }
 0x1fb   :  { %v522_v60 = vadd.f32 %v1670_v33, %v521_v59  ;;  %v1155_v62 = vpop.f32.mrb[29].mxu1  ;;  %v634_v63 = vsel %vm585_vm2, %v1753_v58, -inf }
 0x1fc   :  { %635 = vmax.xlane.f32.xlu0 %v634_v63 }
 0x1fd   :  { %v1758_v0 = vadd.f32 1e-08, %v522_v60 }
 0x1fe   :  { %v526_v1 = vpop.f32.mrb[30].mxu1 }
 0x1ff   :  { %v527_v3 = vadd.f32 %v1670_v33, %v526_v1  ;;  %v1158_v5 = vpop.f32.mrb[31].mxu1  ;;  %v637_v6 = vsel %vm585_vm2, %v1758_v0, -inf }
 0x200   :  { %638 = vmax.xlane.f32.xlu1 %v637_v6 }
 0x201   :  { %v1763_v7 = vadd.f32 1e-08, %v527_v3 }
 0x202   :  { %v531_v9 = vpop.f32.mrb[32].mxu1 }
 0x203   :  { %v532_v10 = vadd.f32 %v1670_v33, %v531_v9  ;;  %v1161_v11 = vpop.f32.mrb[33].mxu1  ;;  %v640_v12 = vsel %vm585_vm2, %v1763_v7, -inf }
 0x204   :  { %641 = vmax.xlane.f32.xlu0 %v640_v12 }
 0x205   :  { %v1768_v14 = vadd.f32 1e-08, %v532_v10 }
 0x206   :  { %v536_v15 = vpop.f32.mrb[34].mxu1 }
 0x207   :  { %v537_v16 = vadd.f32 %v1670_v33, %v536_v15  ;;  %v1164_v17 = vpop.f32.mrb[35].mxu1  ;;  %v643_v19 = vsel %vm585_vm2, %v1768_v14, -inf }
 0x208   :  { %644 = vmax.xlane.f32.xlu1 %v643_v19 }
 0x209   :  { %v1773_v20 = vadd.f32 1e-08, %v537_v16 }
 0x20a   :  { %v541_v21 = vpop.f32.mrb[36].mxu1 }
 0x20b   :  { %v542_v22 = vadd.f32 %v1670_v33, %v541_v21  ;;  %v1167_v24 = vpop.f32.mrb[37].mxu1  ;;  %v646_v25 = vsel %vm585_vm2, %v1773_v20, -inf }
 0x20c   :  { %647 = vmax.xlane.f32.xlu0 %v646_v25 }
 0x20d   :  { %v1778_v26 = vadd.f32 1e-08, %v542_v22 }
 0x20e   :  { %v546_v27 = vpop.f32.mrb[38].mxu1 }
 0x20f   :  { %v547_v29 = vadd.f32 %v1670_v33, %v546_v27  ;;  %v1170_v30 = vpop.f32.mrb[39].mxu1  ;;  %v649_v31 = vsel %vm585_vm2, %v1778_v26, -inf }
 0x210   :  { %650 = vmax.xlane.f32.xlu1 %v649_v31 }
 0x211   :  { %v1783_v32 = vadd.f32 1e-08, %v547_v29 }
 0x212   :  { %v551_v35 = vpop.f32.mrb[40].mxu1 }
 0x213   :  { %v552_v36 = vadd.f32 %v1670_v33, %v551_v35  ;;  %v1173_v57 = vpop.f32.mrb[41].mxu1  ;;  %v652_v38 = vsel %vm585_vm2, %v1783_v32, -inf }
 0x214   :  { %653 = vmax.xlane.f32.xlu0 %v652_v38 }
 0x215   :  { %v1788_v4 = vadd.f32 1e-08, %v552_v36 }
 0x216   :  { %v556_v41 = vpop.f32.mrb[42].mxu1 }
 0x217   :  { %v557_v42 = vadd.f32 %v1670_v33, %v556_v41  ;;  %v1176_v43 = vpop.f32.mrb[43].mxu1  ;;  %v655_v46 = vsel %vm585_vm2, %v1788_v4, -inf }
 0x218   :  { %656 = vmax.xlane.f32.xlu1 %v655_v46 }
 0x219   :  { %v1793_v47 = vadd.f32 1e-08, %v557_v42 }
 0x21b   :  { %v658_v48 = vsel %vm585_vm2, %v1793_v47, -inf }
 0x21c   :  { %659 = vmax.xlane.f32.xlu0 %v658_v48 }
 0x249   :  { %v588_v49 = vpop.xlane.xlu0 %587 }
 0x24a   :  { %v661_v52 = vsub.f32 %v1673_v37, %v588_v49 }
 0x24c   :  { %v686_v53 = vmul.f32 1.442695, %v661_v52 }
 0x24d   :  { %v591_v54 = vpop.xlane.xlu0 %590 }
 0x24e   :  { %1226 = vpow2.f32 %v686_v53  ;;  %v662_v56 = vsub.f32 %v1678_v40, %v591_v54 }
 0x250   :  { %v688_v33 = vmul.f32 1.442695, %v662_v56 }
 0x251   :  { %v594_v59 = vpop.xlane.xlu1 %593 }
 0x252   :  { %1228 = vpow2.f32 %v688_v33  ;;  %v663_v60 = vsub.f32 %v1683_v45, %v594_v59 }
 0x254   :  { %v690_v62 = vmul.f32 1.442695, %v663_v60 }
 0x255   :  { %v597_v63 = vpop.xlane.xlu1 %596 }
 0x256   :  { %1230 = vpow2.f32 %v690_v62  ;;  %v664_v1 = vsub.f32 %v1688_v50, %v597_v63 }
 0x258   :  { %v1801_v3 = vpop.eup %1226  ;;  %v692_v5 = vmul.f32 1.442695, %v664_v1 }
 0x259   :  { %v600_v6 = vpop.xlane.xlu0 %599  ;;  %v736_v37 = vsel %vm585_vm2, %v1801_v3, 0.0 }
 0x25a   :  { %1232 = vpow2.f32 %v692_v5  ;;  %v665_v40 = vsub.f32 %v1693_v55, %v600_v6  ;;  %737 = vadd.xlane.f32.xlu1 %v736_v37 }
 0x25c   :  { %v1806_v9 = vpop.eup %1228  ;;  %v694_v10 = vmul.f32 1.442695, %v665_v40 }
 0x25d   :  { %v603_v45 = vpop.xlane.xlu1 %602  ;;  %v739_v11 = vsel %vm585_vm2, %v1806_v9, 0.0 }
 0x25e   :  { %1234 = vpow2.f32 %v694_v10  ;;  %v666_v50 = vsub.f32 %v1698_v61, %v603_v45  ;;  %740 = vadd.xlane.f32.xlu0 %v739_v11 }
 0x260   :  { %v1811_v12 = vpop.eup %1230  ;;  %v696_v15 = vmul.f32 1.442695, %v666_v50 }
 0x261   :  { %v606_v16 = vpop.xlane.xlu0 %605  ;;  %v742_v17 = vsel %vm585_vm2, %v1811_v12, 0.0 }
 0x262   :  { %1236 = vpow2.f32 %v696_v15  ;;  %v667_v55 = vsub.f32 %v1703_v2, %v606_v16  ;;  %743 = vadd.xlane.f32.xlu1 %v742_v17 }
 0x264   :  { %v1816_v19 = vpop.eup %1232  ;;  %v698_v21 = vmul.f32 1.442695, %v667_v55 }
 0x265   :  { %v609_v22 = vpop.xlane.xlu1 %608  ;;  %v745_v24 = vsel %vm585_vm2, %v1816_v19, 0.0 }
 0x266   :  { %1238 = vpow2.f32 %v698_v21  ;;  %v668_v61 = vsub.f32 %v1708_v8, %v609_v22  ;;  %746 = vadd.xlane.f32.xlu0 %v745_v24 }
 0x268   :  { %v1821_v25 = vpop.eup %1234  ;;  %v700_v27 = vmul.f32 1.442695, %v668_v61 }
 0x269   :  { %v612_v29 = vpop.xlane.xlu0 %611  ;;  %v748_v30 = vsel %vm585_vm2, %v1821_v25, 0.0 }
 0x26a   :  { %1240 = vpow2.f32 %v700_v27  ;;  %v669_v2 = vsub.f32 %v1713_v13, %v612_v29  ;;  %749 = vadd.xlane.f32.xlu1 %v748_v30 }
 0x26c   :  { %v1826_v31 = vpop.eup %1236  ;;  %v702_v35 = vmul.f32 1.442695, %v669_v2 }
 0x26d   :  { %v615_v36 = vpop.xlane.xlu1 %614  ;;  %v751_v57 = vsel %vm585_vm2, %v1826_v31, 0.0 }
 0x26e   :  { %1242 = vpow2.f32 %v702_v35  ;;  %v670_v8 = vsub.f32 %v1718_v18, %v615_v36  ;;  %752 = vadd.xlane.f32.xlu0 %v751_v57 }
 0x270   :  { %v1831_v38 = vpop.eup %1238  ;;  %v704_v41 = vmul.f32 1.442695, %v670_v8 }
 0x271   :  { %v618_v42 = vpop.xlane.xlu0 %617  ;;  %v754_v43 = vsel %vm585_vm2, %v1831_v38, 0.0 }
 0x272   :  { %1244 = vpow2.f32 %v704_v41  ;;  %v671_v13 = vsub.f32 %v1723_v23, %v618_v42  ;;  %755 = vadd.xlane.f32.xlu1 %v754_v43 }
 0x274   :  { %v1836_v46 = vpop.eup %1240  ;;  %v706_v48 = vmul.f32 1.442695, %v671_v13 }
 0x275   :  { %v621_v49 = vpop.xlane.xlu1 %620  ;;  %v757_v52 = vsel %vm585_vm2, %v1836_v46, 0.0 }
 0x276   :  { %1246 = vpow2.f32 %v706_v48  ;;  %v672_v18 = vsub.f32 %v1728_v28, %v621_v49  ;;  %758 = vadd.xlane.f32.xlu0 %v757_v52 }
 0x278   :  { %v1841_v53 = vpop.eup %1242  ;;  %v708_v54 = vmul.f32 1.442695, %v672_v18 }
 0x279   :  { %v624_v56 = vpop.xlane.xlu0 %623  ;;  %v760_v33 = vsel %vm585_vm2, %v1841_v53, 0.0 }
 0x27a   :  { %1248 = vpow2.f32 %v708_v54  ;;  %v673_v23 = vsub.f32 %v1733_v34, %v624_v56  ;;  %761 = vadd.xlane.f32.xlu1 %v760_v33 }
 0x27c   :  { %v1846_v59 = vpop.eup %1244  ;;  %v710_v60 = vmul.f32 1.442695, %v673_v23 }
 0x27d   :  { %v627_v62 = vpop.xlane.xlu1 %626  ;;  %v763_v63 = vsel %vm585_vm2, %v1846_v59, 0.0 }
 0x27e   :  { %1250 = vpow2.f32 %v710_v60  ;;  %v674_v28 = vsub.f32 %v1738_v39, %v627_v62  ;;  %764 = vadd.xlane.f32.xlu0 %v763_v63 }
 0x280   :  { %v1851_v1 = vpop.eup %1246  ;;  %v712_v5 = vmul.f32 1.442695, %v674_v28 }
 0x281   :  { %v630_v6 = vpop.xlane.xlu0 %629  ;;  %v766_v37 = vsel %vm585_vm2, %v1851_v1, 0.0 }
 0x282   :  { %1252 = vpow2.f32 %v712_v5  ;;  %v675_v34 = vsub.f32 %v1743_v44, %v630_v6  ;;  %767 = vadd.xlane.f32.xlu1 %v766_v37 }
 0x284   :  { %v1856_v40 = vpop.eup %1248  ;;  %v714_v10 = vmul.f32 1.442695, %v675_v34 }
 0x285   :  { %v633_v45 = vpop.xlane.xlu1 %632  ;;  %v769_v11 = vsel %vm585_vm2, %v1856_v40, 0.0 }
 0x286   :  { %1254 = vpow2.f32 %v714_v10  ;;  %v676_v39 = vsub.f32 %v1748_v51, %v633_v45  ;;  %770 = vadd.xlane.f32.xlu0 %v769_v11 }
 0x288   :  { %v1861_v50 = vpop.eup %1250  ;;  %v716_v15 = vmul.f32 1.442695, %v676_v39 }
 0x289   :  { %v636_v16 = vpop.xlane.xlu0 %635  ;;  %v772_v17 = vsel %vm585_vm2, %v1861_v50, 0.0 }
 0x28a   :  { %1256 = vpow2.f32 %v716_v15  ;;  %v677_v44 = vsub.f32 %v1753_v58, %v636_v16  ;;  %773 = vadd.xlane.f32.xlu1 %v772_v17 }
 0x28c   :  { %v1866_v55 = vpop.eup %1252  ;;  %v718_v21 = vmul.f32 1.442695, %v677_v44 }
 0x28d   :  { %v639_v22 = vpop.xlane.xlu1 %638  ;;  %v775_v24 = vsel %vm585_vm2, %v1866_v55, 0.0 }
 0x28e   :  { %1258 = vpow2.f32 %v718_v21  ;;  %v678_v51 = vsub.f32 %v1758_v0, %v639_v22  ;;  %776 = vadd.xlane.f32.xlu0 %v775_v24 }
 0x290   :  { %v1871_v61 = vpop.eup %1254  ;;  %v720_v27 = vmul.f32 1.442695, %v678_v51 }
 0x291   :  { %v642_v29 = vpop.xlane.xlu0 %641  ;;  %v778_v30 = vsel %vm585_vm2, %v1871_v61, 0.0 }
 0x292   :  { %1260 = vpow2.f32 %v720_v27  ;;  %v679_v58 = vsub.f32 %v1763_v7, %v642_v29  ;;  %779 = vadd.xlane.f32.xlu1 %v778_v30 }
 0x294   :  { %v1876_v2 = vpop.eup %1256  ;;  %v722_v35 = vmul.f32 1.442695, %v679_v58 }
 0x295   :  { %v645_v36 = vpop.xlane.xlu1 %644  ;;  %v781_v57 = vsel %vm585_vm2, %v1876_v2, 0.0 }
 0x296   :  { %1262 = vpow2.f32 %v722_v35  ;;  %v680_v0 = vsub.f32 %v1768_v14, %v645_v36  ;;  %782 = vadd.xlane.f32.xlu0 %v781_v57 }
 0x298   :  { %v1881_v8 = vpop.eup %1258  ;;  %v724_v41 = vmul.f32 1.442695, %v680_v0 }
 0x299   :  { %v648_v42 = vpop.xlane.xlu0 %647  ;;  %v784_v43 = vsel %vm585_vm2, %v1881_v8, 0.0 }
 0x29a   :  { %1264 = vpow2.f32 %v724_v41  ;;  %v681_v7 = vsub.f32 %v1773_v20, %v648_v42  ;;  %785 = vadd.xlane.f32.xlu1 %v784_v43 }
 0x29c   :  { %v1886_v13 = vpop.eup %1260  ;;  %v726_v48 = vmul.f32 1.442695, %v681_v7 }
 0x29d   :  { %v651_v49 = vpop.xlane.xlu1 %650  ;;  %v787_v52 = vsel %vm585_vm2, %v1886_v13, 0.0 }
 0x29e   :  { %1266 = vpow2.f32 %v726_v48  ;;  %v682_v14 = vsub.f32 %v1778_v26, %v651_v49  ;;  %788 = vadd.xlane.f32.xlu0 %v787_v52 }
 0x2a0   :  { %v1891_v18 = vpop.eup %1262  ;;  %v728_v54 = vmul.f32 1.442695, %v682_v14 }
 0x2a1   :  { %v654_v56 = vpop.xlane.xlu0 %653  ;;  %v790_v33 = vsel %vm585_vm2, %v1891_v18, 0.0 }
 0x2a2   :  { %1268 = vpow2.f32 %v728_v54  ;;  %v683_v20 = vsub.f32 %v1783_v32, %v654_v56  ;;  %791 = vadd.xlane.f32.xlu1 %v790_v33 }
 0x2a4   :  { %v1896_v23 = vpop.eup %1264  ;;  %v730_v60 = vmul.f32 1.442695, %v683_v20 }
 0x2a5   :  { %v657_v62 = vpop.xlane.xlu1 %656  ;;  %v793_v63 = vsel %vm585_vm2, %v1896_v23, 0.0 }
 0x2a6   :  { %1270 = vpow2.f32 %v730_v60  ;;  %v684_v26 = vsub.f32 %v1788_v4, %v657_v62  ;;  %794 = vadd.xlane.f32.xlu0 %v793_v63 }
 0x2a8   :  { %v1901_v28 = vpop.eup %1266  ;;  %v732_v5 = vmul.f32 1.442695, %v684_v26 }
 0x2a9   :  { %v660_v6 = vpop.xlane.xlu0 %659  ;;  %v796_v37 = vsel %vm585_vm2, %v1901_v28, 0.0 }
 0x2aa   :  { %1272 = vpow2.f32 %v732_v5  ;;  %v685_v32 = vsub.f32 %v1793_v47, %v660_v6  ;;  %797 = vadd.xlane.f32.xlu1 %v796_v37 }
 0x2ac   :  { %v1906_v34 = vpop.eup %1268  ;;  %v734_v10 = vmul.f32 1.442695, %v685_v32 }
 0x2ad   :  { %v799_v45 = vsel %vm585_vm2, %v1906_v34, 0.0 }
 0x2ae   :  { %1274 = vpow2.f32 %v734_v10  ;;  %800 = vadd.xlane.f32.xlu0 %v799_v45 }
 0x2b0   :  { %v1910_v4 = vpop.eup %1270 }
 0x2b1   :  { %v802_v11 = vsel %vm585_vm2, %v1910_v4, 0.0 }
 0x2b2   :  { %803 = vadd.xlane.f32.xlu1 %v802_v11 }
 0x2b4   :  { %v1914_v39 = vpop.eup %1272 }
 0x2b5   :  { %v805_v47 = vsel %vm585_vm2, %v1914_v39, 0.0 }
 0x2b6   :  { %806 = vadd.xlane.f32.xlu0 %v805_v47 }
 0x2b8   :  { %v1918_v15 = vpop.eup %1274 }
 0x2b9   :  { %v808_v16 = vsel %vm585_vm2, %v1918_v15, 0.0 }
 0x2ba   :  { %809 = vadd.xlane.f32.xlu1 %v808_v16 }
 0x2e7   :  { %v738_v17 = vpop.xlane.xlu1 %737 }
 0x2e8   :  { %1276 = vrcp.f32 %v738_v17 }
 0x2eb   :  { %v741_v44 = vpop.xlane.xlu0 %740 }
 0x2ec   :  { %1278 = vrcp.f32 %v741_v44 }
 0x2ef   :  { %v744_v21 = vpop.xlane.xlu1 %743 }
 0x2f0   :  { %1280 = vrcp.f32 %v744_v21 }
 0x2f2   :  { %v1277_v22 = vpop.eup %1276 }
 0x2f3   :  { %v812_v24 = vmul.f32 %v1277_v22, %v1801_v3  ;;  %v747_v51 = vpop.xlane.xlu0 %746 }
 0x2f4   :  { %1282 = vrcp.f32 %v747_v51 }
 0x2f5   :  { %861 = vst.msk [vmem:[%s2052_s5] sm:$0xff] %vm585_vm2, %v812_v24 }
 0x2f6   :  { %v1279_v27 = vpop.eup %1278 }
 0x2f7   :  { %v814_v29 = vmul.f32 %v1279_v27, %v1806_v9  ;;  %v750_v30 = vpop.xlane.xlu1 %749 }
 0x2f8   :  { %1284 = vrcp.f32 %v750_v30 }
 0x2f9   :  { %862 = vst.msk [vmem:[%s2052_s5 + $0x8] sm:$0xff] %vm585_vm2, %v814_v29 }
 0x2fa   :  { %v1281_v58 = vpop.eup %1280 }
 0x2fb   :  { %v816_v3 = vmul.f32 %v1281_v58, %v1811_v12  ;;  %v753_v35 = vpop.xlane.xlu0 %752 }
 0x2fc   :  { %1286 = vrcp.f32 %v753_v35 }
 0x2fd   :  { %863 = vst.msk [vmem:[%s2052_s5 + $0x10] sm:$0xff] %vm585_vm2, %v816_v3 }
 0x2fe   :  { %v1283_v36 = vpop.eup %1282 }
 0x2ff   :  { %v818_v9 = vmul.f32 %v1283_v36, %v1816_v19  ;;  %v756_v57 = vpop.xlane.xlu1 %755 }
 0x300   :  { %1288 = vrcp.f32 %v756_v57 }
 0x301   :  { %864 = vst.msk [vmem:[%s2052_s5 + $0x18] sm:$0xff] %vm585_vm2, %v818_v9 }
 0x302   :  { %v1285_v0 = vpop.eup %1284 }
 0x303   :  { %v820_v12 = vmul.f32 %v1285_v0, %v1821_v25  ;;  %v759_v41 = vpop.xlane.xlu0 %758 }
 0x304   :  { %1290 = vrcp.f32 %v759_v41 }
 0x305   :  { %865 = vst.msk [vmem:[%s2052_s5 + $0x20] sm:$0xff] %vm585_vm2, %v820_v12 }
 0x306   :  { %v1287_v42 = vpop.eup %1286 }
 0x307   :  { %v822_v19 = vmul.f32 %v1287_v42, %v1826_v31  ;;  %v762_v43 = vpop.xlane.xlu1 %761 }
 0x308   :  { %1292 = vrcp.f32 %v762_v43 }
 0x309   :  { %866 = vst.msk [vmem:[%s2052_s5 + $0x28] sm:$0xff] %vm585_vm2, %v822_v19 }
 0x30a   :  { %v1289_v7 = vpop.eup %1288 }
 0x30b   :  { %v824_v25 = vmul.f32 %v1289_v7, %v1831_v38  ;;  %v765_v48 = vpop.xlane.xlu0 %764 }
 0x30c   :  { %1294 = vrcp.f32 %v765_v48 }
 0x30d   :  { %867 = vst.msk [vmem:[%s2052_s5 + $0x30] sm:$0xff] %vm585_vm2, %v824_v25 }
 0x30e   :  { %v1291_v49 = vpop.eup %1290 }
 0x30f   :  { %v826_v31 = vmul.f32 %v1291_v49, %v1836_v46  ;;  %v768_v52 = vpop.xlane.xlu1 %767 }
 0x310   :  { %1296 = vrcp.f32 %v768_v52 }
 0x311   :  { %868 = vst.msk [vmem:[%s2052_s5 + $0x38] sm:$0xff] %vm585_vm2, %v826_v31 }
 0x312   :  { %v1293_v14 = vpop.eup %1292 }
 0x313   :  { %v828_v38 = vmul.f32 %v1293_v14, %v1841_v53  ;;  %v771_v54 = vpop.xlane.xlu0 %770 }
 0x314   :  { %1298 = vrcp.f32 %v771_v54 }
 0x315   :  { %869 = vst.msk [vmem:[%s2052_s5 + $0x40] sm:$0xff] %vm585_vm2, %v828_v38 }
 0x316   :  { %v1295_v56 = vpop.eup %1294 }
 0x317   :  { %v830_v46 = vmul.f32 %v1295_v56, %v1846_v59  ;;  %v774_v33 = vpop.xlane.xlu1 %773 }
 0x318   :  { %1300 = vrcp.f32 %v774_v33 }
 0x319   :  { %870 = vst.msk [vmem:[%s2052_s5 + $0x48] sm:$0xff] %vm585_vm2, %v830_v46 }
 0x31a   :  { %v1297_v20 = vpop.eup %1296 }
 0x31b   :  { %v832_v53 = vmul.f32 %v1297_v20, %v1851_v1  ;;  %v777_v60 = vpop.xlane.xlu0 %776 }
 0x31c   :  { %1302 = vrcp.f32 %v777_v60 }
 0x31d   :  { %871 = vst.msk [vmem:[%s2052_s5 + $0x50] sm:$0xff] %vm585_vm2, %v832_v53 }
 0x31e   :  { %v1299_v62 = vpop.eup %1298 }
 0x31f   :  { %v834_v59 = vmul.f32 %v1299_v62, %v1856_v40  ;;  %v780_v63 = vpop.xlane.xlu1 %779 }
 0x320   :  { %1304 = vrcp.f32 %v780_v63 }
 0x321   :  { %872 = vst.msk [vmem:[%s2052_s5 + $0x58] sm:$0xff] %vm585_vm2, %v834_v59 }
 0x322   :  { %v1301_v26 = vpop.eup %1300 }
 0x323   :  { %v836_v1 = vmul.f32 %v1301_v26, %v1861_v50  ;;  %v783_v5 = vpop.xlane.xlu0 %782 }
 0x324   :  { %1306 = vrcp.f32 %v783_v5 }
 0x325   :  { %873 = vst.msk [vmem:[%s2052_s5 + $0x60] sm:$0xff] %vm585_vm2, %v836_v1 }
 0x326   :  { %v1303_v6 = vpop.eup %1302 }
 0x327   :  { %v838_v40 = vmul.f32 %v1303_v6, %v1866_v55  ;;  %v786_v37 = vpop.xlane.xlu1 %785 }
 0x328   :  { %1308 = vrcp.f32 %v786_v37 }
 0x329   :  { %874 = vst.msk [vmem:[%s2052_s5 + $0x68] sm:$0xff] %vm585_vm2, %v838_v40 }
 0x32a   :  { %v1305_v32 = vpop.eup %1304 }
 0x32b   :  { %v840_v50 = vmul.f32 %v1305_v32, %v1871_v61  ;;  %v789_v10 = vpop.xlane.xlu0 %788 }
 0x32c   :  { %1310 = vrcp.f32 %v789_v10 }
 0x32d   :  { %875 = vst.msk [vmem:[%s2052_s5 + $0x70] sm:$0xff] %vm585_vm2, %v840_v50 }
 0x32e   :  { %v1307_v45 = vpop.eup %1306 }
 0x32f   :  { %v842_v55 = vmul.f32 %v1307_v45, %v1876_v2  ;;  %v792_v11 = vpop.xlane.xlu1 %791 }
 0x330   :  { %1312 = vrcp.f32 %v792_v11 }
 0x331   :  { %876 = vst.msk [vmem:[%s2052_s5 + $0x78] sm:$0xff] %vm585_vm2, %v842_v55 }
 0x332   :  { %v1309_v47 = vpop.eup %1308 }
 0x333   :  { %v844_v61 = vmul.f32 %v1309_v47, %v1881_v8  ;;  %v795_v16 = vpop.xlane.xlu0 %794 }
 0x334   :  { %1314 = vrcp.f32 %v795_v16 }
 0x335   :  { %877 = vst.msk [vmem:[%s2052_s5 + $0x80] sm:$0xff] %vm585_vm2, %v844_v61 }
 0x336   :  { %v1311_v17 = vpop.eup %1310 }
 0x337   :  { %v846_v2 = vmul.f32 %v1311_v17, %v1886_v13  ;;  %v798_v44 = vpop.xlane.xlu1 %797 }
 0x338   :  { %1316 = vrcp.f32 %v798_v44 }
 0x339   :  { %878 = vst.msk [vmem:[%s2052_s5 + $0x88] sm:$0xff] %vm585_vm2, %v846_v2 }
 0x33a   :  { %v1313_v21 = vpop.eup %1312 }
 0x33b   :  { %v848_v8 = vmul.f32 %v1313_v21, %v1891_v18  ;;  %v801_v22 = vpop.xlane.xlu0 %800 }
 0x33c   :  { %1318 = vrcp.f32 %v801_v22 }
 0x33d   :  { %879 = vst.msk [vmem:[%s2052_s5 + $0x90] sm:$0xff] %vm585_vm2, %v848_v8 }
 0x33e   :  { %v1315_v24 = vpop.eup %1314 }
 0x33f   :  { %v850_v13 = vmul.f32 %v1315_v24, %v1896_v23  ;;  %v804_v51 = vpop.xlane.xlu1 %803 }
 0x340   :  { %1320 = vrcp.f32 %v804_v51 }
 0x341   :  { %880 = vst.msk [vmem:[%s2052_s5 + $0x98] sm:$0xff] %vm585_vm2, %v850_v13 }
 0x342   :  { %v1317_v27 = vpop.eup %1316 }
 0x343   :  { %v852_v18 = vmul.f32 %v1317_v27, %v1901_v28  ;;  %v807_v29 = vpop.xlane.xlu0 %806 }
 0x344   :  { %1322 = vrcp.f32 %v807_v29 }
 0x345   :  { %881 = vst.msk [vmem:[%s2052_s5 + $0xa0] sm:$0xff] %vm585_vm2, %v852_v18 }
 0x346   :  { %v1319_v30 = vpop.eup %1318 }
 0x347   :  { %v854_v23 = vmul.f32 %v1319_v30, %v1906_v34  ;;  %v810_v58 = vpop.xlane.xlu1 %809 }
 0x348   :  { %1324 = vrcp.f32 %v810_v58 }
 0x349   :  { %882 = vst.msk [vmem:[%s2052_s5 + $0xa8] sm:$0xff] %vm585_vm2, %v854_v23 }
 0x34a   :  { %v1321_v3 = vpop.eup %1320 }
 0x34b   :  { %v856_v28 = vmul.f32 %v1321_v3, %v1910_v4 }
 0x34d   :  { %883 = vst.msk [vmem:[%s2052_s5 + $0xb0] sm:$0xff] %vm585_vm2, %v856_v28 }
 0x34e   :  { %v1323_v35 = vpop.eup %1322 }
 0x34f   :  { %v858_v36 = vmul.f32 %v1323_v35, %v1914_v39 }
 0x351   :  { %884 = vst.msk [vmem:[%s2052_s5 + $0xb8] sm:$0xff] %vm585_vm2, %v858_v36 }
 0x352   :  { %v1325_v34 = vpop.eup %1324 }
 0x353   :  { %v860_v9 = vmul.f32 %v1325_v34, %v1918_v15 }
 0x355   :  { %885 = vst.msk [vmem:[%s2052_s5 + $0xc0] sm:$0xff] %vm585_vm2, %v860_v9 }

</bundles_post_ra>
